<compile_context>
chip_gen: v5e
topology: v5e:2x2
jax: 0.10.0
libtpu: 0.0.40
codegen_flags: <defaults>
</compile_context>

<pallas_src>
import functools

import jax
import jax.numpy as jnp
from jax import lax
from jax.experimental import pallas as pl
from jax.experimental.pallas import tpu as pltpu


def _attention_kernel(x_ref, wf_ref, wp_ref, bp_ref, o_ref, qkv_ref, acc_ref, *,
                      num_heads, head_dim, in_dim, tq, compute_dtype,
                      approx_recip):
    """One (batch, q-tile) grid step.

    x_ref   : (1, N, C)           full-sequence activations of this batch elem
    wf_ref  : (C, 2*in_dim + Dp)  fused [q*scale | k | v(pad)] weight
    wp_ref  : (in_dim, Dp)        output projection weight (lane padded)
    bp_ref  : (1, Dp)             output projection bias (lane padded)
    o_ref   : (1, tq, Dp)         output tile
    qkv_ref : (N, 2*in_dim + Dp)  VMEM scratch: fused QKV of the whole sequence
    acc_ref : (tq, Dp) f32        VMEM scratch: projection accumulator
    """
    qi = pl.program_id(1)

    # ---- Fused QKV projection: ONE wide MXU matmul per batch element. -----
    # q columns are pre-scaled in the wrapper, so no per-score multiply later.
    @pl.when(qi == 0)
    def _():
        xc = x_ref[0].astype(compute_dtype)                       # (N, C)
        wf = wf_ref[...].astype(compute_dtype)                    # (C, TOT)
        qkv = jnp.dot(xc, wf, preferred_element_type=jnp.float32)
        qkv_ref[...] = qkv.astype(compute_dtype)

    # Rows belonging to the current q tile.
    row0 = pl.multiple_of(qi * tq, tq)
    rows = qkv_ref[pl.ds(row0, tq), :]                            # (tq, TOT)
    q_tile = rows[:, :in_dim]                                     # pre-scaled q
    v_res = rows[:, 2 * in_dim:]                                  # (tq, Dp)

    # Residual (flattened v) + bias initialize the projection accumulator.
    acc_ref[...] = v_res.astype(jnp.float32) + bp_ref[...].astype(jnp.float32)

    # ---- Per-head attention, accumulating straight into the projection ----
    # (no concatenate of sub-128-lane head outputs).  num_heads is a small,
    # static count, so a Python loop with static slices is used; per-head
    # intermediates die at the VMEM accumulator store each iteration.
    for h in range(num_heads):
        c0 = h * head_dim
        qh = q_tile[:, c0:c0 + head_dim]                          # (tq, hd)
        kh = qkv_ref[:, in_dim + c0:in_dim + c0 + head_dim]       # (N, hd)
        vh = qkv_ref[:, 2 * in_dim + c0:2 * in_dim + c0 + head_dim]  # (N, hd)

        # scores = (q * scale) @ k^T  (contraction over head_dim, no transpose op)
        s = lax.dot_general(qh, kh, (((1,), (1,)), ((), ())),
                            preferred_element_type=jnp.float32)   # (tq, N)
        m = jnp.max(s, axis=-1, keepdims=True)
        e = jnp.exp(s - m)                                        # f32 on VPU/EUP
        denom = jnp.sum(e, axis=-1, keepdims=True)
        p = e * pl.reciprocal(denom, approx=approx_recip)

        oh = jnp.dot(p.astype(compute_dtype), vh,
                     preferred_element_type=jnp.float32)          # (tq, hd)
        wp_h = wp_ref[c0:c0 + head_dim, :].astype(compute_dtype)  # (hd, Dp)
        acc_ref[...] += jnp.dot(oh.astype(compute_dtype), wp_h,
                                preferred_element_type=jnp.float32)

    # Lane-dense (multiple-of-128 wide) store.
    o_ref[0] = acc_ref[...].astype(o_ref.dtype)


def _round_up(x, m):
    return (x + m - 1) // m * m


def attention_forward(x, w_qkv, w_proj, b_proj, *, dim, num_heads, in_dim,
                      q_tile=256, compute_dtype=None):
    """x: (B, N, C=dim); w_qkv: (dim, 3*in_dim); w_proj: (in_dim, in_dim); b_proj: (in_dim,).

    Weights are stored as (in_features, out_features) (transpose of torch Linear.weight).
    Pass compute_dtype=jnp.bfloat16 for the fast MXU-operand path (f32 accumulation).
    """
    B, N, C = x.shape
    assert C == dim
    assert in_dim % num_heads == 0
    head_dim = in_dim // num_heads
    scale = float((dim // num_heads) ** (-0.5))
    if compute_dtype is None:
        compute_dtype = x.dtype
    compute_dtype = jnp.dtype(compute_dtype)
    approx_recip = bool(compute_dtype != jnp.dtype(jnp.float32))

    # Lane-dense output layout: pad in_dim up to a multiple of 128.
    in_dim_p = max(128, _round_up(in_dim, 128))
    pad = in_dim_p - in_dim
    tot = 2 * in_dim + in_dim_p

    # q-tile size: largest multiple of 8 dividing N that is <= q_tile.
    tq = N
    q_tile8 = max(8, (q_tile // 8) * 8)
    if N > q_tile8 and N % 8 == 0:
        for cand in range(q_tile8, 7, -8):
            if N % cand == 0:
                tq = cand
                break
    num_q_tiles = N // tq

    # One-time parameter prep (would be folded into the checkpoint in practice):
    # fold softmax scale into q columns, fuse q|k|v, lane-pad v/proj/bias.
    wq = w_qkv[:, :in_dim] * scale
    wk = w_qkv[:, in_dim:2 * in_dim]
    wv = w_qkv[:, 2 * in_dim:]
    if pad:
        wv = jnp.pad(wv, ((0, 0), (0, pad)))
        w_proj_p = jnp.pad(w_proj, ((0, 0), (0, pad)))
        b_proj_p = jnp.pad(b_proj, (0, pad))
    else:
        w_proj_p, b_proj_p = w_proj, b_proj
    w_fused = jnp.concatenate([wq, wk, wv], axis=1).astype(compute_dtype)  # (C, tot)
    w_proj_p = w_proj_p.astype(compute_dtype)
    b_proj_p = b_proj_p.reshape(1, in_dim_p)

    kern = functools.partial(
        _attention_kernel, num_heads=num_heads, head_dim=head_dim,
        in_dim=in_dim, tq=tq, compute_dtype=compute_dtype,
        approx_recip=approx_recip)

    # Explicit VMEM budget (double-buffered pipelined operands + scratch).
    itemsize = x.dtype.itemsize
    cd_size = compute_dtype.itemsize
    vmem_needed = (
        2 * N * C * itemsize                                   # x
        + 2 * tq * in_dim_p * itemsize                         # out tile
        + 2 * (C * tot + in_dim * in_dim_p) * cd_size          # weights
        + 2 * in_dim_p * b_proj_p.dtype.itemsize               # bias
        + N * tot * cd_size                                    # fused-QKV scratch
        + tq * in_dim_p * 4                                    # accumulator scratch
        + (tq * N + N * head_dim) * 4                          # per-head live tiles
    )
    try:
        vmem_cap = int(pltpu.get_tpu_info().vmem_capacity_bytes)
    except Exception:
        vmem_cap = 64 * 1024 * 1024                            # v7x-safe fallback
    vmem_limit = int(min(max(2 * vmem_needed, 32 * 1024 * 1024),
                         int(0.75 * vmem_cap)))

    flops = (2 * B * N * C * tot                 # fused qkv projection
             + 4 * B * N * N * in_dim            # scores + attn @ v (all heads)
             + 2 * B * N * in_dim * in_dim_p)    # output projection
    cost = pl.CostEstimate(
        flops=int(flops),
        transcendentals=int(B * num_heads * N * N),
        bytes_accessed=int(B * N * C * itemsize + B * N * in_dim_p * itemsize
                           + (C * tot + in_dim * in_dim_p + in_dim_p) * cd_size))

    out = pl.pallas_call(
        kern,
        out_shape=jax.ShapeDtypeStruct((B, N, in_dim_p), x.dtype),
        grid=(B, num_q_tiles),
        in_specs=[
            pl.BlockSpec((1, N, C), lambda b, qi: (b, 0, 0)),          # x (full seq)
            pl.BlockSpec((C, tot), lambda b, qi: (0, 0)),              # fused qkv W
            pl.BlockSpec((in_dim, in_dim_p), lambda b, qi: (0, 0)),    # proj W
            pl.BlockSpec((1, in_dim_p), lambda b, qi: (0, 0)),         # proj bias
        ],
        out_specs=pl.BlockSpec((1, tq, in_dim_p), lambda b, qi: (b, qi, 0)),
        scratch_shapes=[
            pltpu.VMEM((N, tot), compute_dtype),       # fused QKV of whole sequence
            pltpu.VMEM((tq, in_dim_p), jnp.float32),   # projection accumulator
        ],
        compiler_params=pltpu.CompilerParams(
            # q-tile axis stays "arbitrary" so the fused-QKV scratch computed
            # at qi == 0 is reused by later tiles of the same batch element.
            dimension_semantics=("parallel", "arbitrary"),
            vmem_limit_bytes=vmem_limit),
        cost_estimate=cost,
    )(x, w_fused, w_proj_p, b_proj_p)

    return out[..., :in_dim] if pad else out


def attention_reference(x, w_qkv, w_proj, b_proj, *, dim, num_heads, in_dim):
    B, N, C = x.shape
    hd = in_dim // num_heads
    scale = (dim // num_heads) ** (-0.5)
    qkv = (x @ w_qkv).reshape(B, N, 3, num_heads, hd).transpose(2, 0, 3, 1, 4)
    q, k, v = qkv[0], qkv[1], qkv[2]                      # (B, H, N, hd)
    attn = jnp.einsum("bhnd,bhmd->bhnm", q, k) * scale
    attn = jax.nn.softmax(attn, axis=-1)
    o = jnp.einsum("bhnm,bhmd->bhnd", attn, v)
    o = o.transpose(0, 2, 1, 3).reshape(B, N, in_dim)
    v_flat = v.transpose(0, 2, 1, 3).reshape(B, N, in_dim)
    return v_flat + (o @ w_proj + b_proj)


if __name__ == "__main__":
    # Small shapes consistent with the module.
    B, N, dim = 2, 8, 32
    num_heads = 4
    in_dim = 32

    key = jax.random.PRNGKey(0)
    kx, kqkv, kp, kb = jax.random.split(key, 4)
    x = jax.random.normal(kx, (B, N, dim), dtype=jnp.float32)
    # Deterministic synthetic parameters (nn.Linear shapes, stored transposed).
    w_qkv = 0.02 * jax.random.normal(kqkv, (dim, 3 * in_dim), dtype=jnp.float32)
    w_proj = 0.02 * jax.random.normal(kp, (in_dim, in_dim), dtype=jnp.float32)
    b_proj = 0.02 * jax.random.normal(kb, (in_dim,), dtype=jnp.float32)
    # NOTE: attn_drop / proj_drop are identity in eval; norm1 is unused in forward.

    ref = attention_reference(x, w_qkv, w_proj, b_proj,
                              dim=dim, num_heads=num_heads, in_dim=in_dim)

    # f32 compute path: strict check against the reference.
    out = attention_forward(x, w_qkv, w_proj, b_proj,
                            dim=dim, num_heads=num_heads, in_dim=in_dim)
    out = jax.block_until_ready(out)
    assert out.shape == (B, N, in_dim)
    assert jnp.allclose(out, ref, atol=1e-5, rtol=1e-5), "f32 mismatch vs. reference"

    # bf16 MXU-operand path (recommended perf configuration): loose check.
    out_bf16 = attention_forward(x, w_qkv, w_proj, b_proj,
                                 dim=dim, num_heads=num_heads, in_dim=in_dim,
                                 compute_dtype=jnp.bfloat16)
    out_bf16 = jax.block_until_ready(out_bf16)
    assert jnp.allclose(out_bf16, ref, atol=5e-2, rtol=5e-2), "bf16 mismatch vs. reference"

    print("KERNEL_OK")
</pallas_src>

<mosaic_0001>
module attributes {stable_mosaic.version = 11 : i64} {
  func.func @_attention_kernel(%arg0: i32, %arg1: i32, %arg2: memref<1x8x32xf32, #tpu.memory_space<vmem>>, %arg3: memref<32x192xf32, #tpu.memory_space<vmem>>, %arg4: memref<32x128xf32, #tpu.memory_space<vmem>>, %arg5: memref<1x128xf32, #tpu.memory_space<vmem>>, %arg6: memref<1x8x128xf32, #tpu.memory_space<vmem>>, %arg7: memref<8x192xf32, #tpu.memory_space<vmem>>, %arg8: memref<8x128xf32, #tpu.memory_space<vmem>>) attributes {dimension_semantics = [#tpu.dimension_semantics<parallel>, #tpu.dimension_semantics<arbitrary>], iteration_bounds = array<i64: 2, 1>, scalar_prefetch = 0 : i64, scratch_operands = 2 : i64, tpu.core_type = #tpu.core_type<tc>, window_params = [{transform_indices = @transform_0, window_bounds = array<i64: 1, 8, 32>}, {pipeline_mode = #tpu.pipeline_mode<synchronous>, transform_indices = @transform_1, window_bounds = array<i64: 32, 192>}, {pipeline_mode = #tpu.pipeline_mode<synchronous>, transform_indices = @transform_2, window_bounds = array<i64: 32, 128>}, {pipeline_mode = #tpu.pipeline_mode<synchronous>, transform_indices = @transform_3, window_bounds = array<i64: 1, 128>}, {transform_indices = @transform_4, window_bounds = array<i64: 1, 8, 128>}]} {
    %c0_i32 = arith.constant 0 : i32
    %0 = arith.cmpi eq, %arg1, %c0_i32 : i32
    %1 = arith.extui %0 : i1 to i32
    %c0_i32_0 = arith.constant 0 : i32
    %2 = arith.cmpi ne, %1, %c0_i32_0 : i32
    scf.if %2 {
      %c0_58 = arith.constant 0 : index
      %c0_59 = arith.constant 0 : index
      %c0_60 = arith.constant 0 : index
      %97 = vector.load %arg2[%c0_58, %c0_59, %c0_60] : memref<1x8x32xf32, #tpu.memory_space<vmem>>, vector<1x8x32xf32>
      %98 = vector.shape_cast %97 : vector<1x8x32xf32> to vector<8x32xf32>
      %c0_61 = arith.constant 0 : index
      %c0_62 = arith.constant 0 : index
      %99 = vector.load %arg3[%c0_61, %c0_62] : memref<32x192xf32, #tpu.memory_space<vmem>>, vector<32x192xf32>
      %cst_63 = arith.constant dense<0.000000e+00> : vector<8x192xf32>
      %100 = tpu.matmul %98, %99, %cst_63 {dimension_numbers = #tpu.dot_dimension_numbers<[1], [0], [0], [1], [0, 0, 1, 1], [], []>} : vector<8x32xf32>, vector<32x192xf32>, vector<8x192xf32> -> vector<8x192xf32>
      %c0_64 = arith.constant 0 : index
      %c0_65 = arith.constant 0 : index
      %101 = vector.load %arg7[%c0_64, %c0_65] : memref<8x192xf32, #tpu.memory_space<vmem>>, vector<8x192xf32>
      tpu.vector_store %arg7[%c0_64, %c0_65], %100 {strides = array<i32>} : memref<8x192xf32, #tpu.memory_space<vmem>>, vector<8x192xf32>,
    } else {
    }
    %c8_i32 = arith.constant 8 : i32
    %3 = arith.muli %arg1, %c8_i32 : i32
    %4 = tpu.assume_multiple %3, 8 : i32
    %5 = arith.index_cast %4 : i32 to index
    %c0 = arith.constant 0 : index
    %6 = vector.load %arg7[%5, %c0] : memref<8x192xf32, #tpu.memory_space<vmem>>, vector<8x192xf32>
    %7 = vector.extract_strided_slice %6 {offsets = [0, 0], sizes = [8, 32], strides = [1, 1]} : vector<8x192xf32> to vector<8x32xf32>
    %8 = vector.extract_strided_slice %6 {offsets = [0, 64], sizes = [8, 128], strides = [1, 1]} : vector<8x192xf32> to vector<8x128xf32>
    %c0_1 = arith.constant 0 : index
    %c0_2 = arith.constant 0 : index
    %9 = vector.load %arg5[%c0_1, %c0_2] : memref<1x128xf32, #tpu.memory_space<vmem>>, vector<1x128xf32>
    %10 = vector.broadcast %9 : vector<1x128xf32> to vector<8x128xf32>
    %11 = arith.addf %8, %10 : vector<8x128xf32>
    %c0_3 = arith.constant 0 : index
    %c0_4 = arith.constant 0 : index
    %12 = vector.load %arg8[%c0_3, %c0_4] : memref<8x128xf32, #tpu.memory_space<vmem>>, vector<8x128xf32>
    tpu.vector_store %arg8[%c0_3, %c0_4], %11 {strides = array<i32>} : memref<8x128xf32, #tpu.memory_space<vmem>>, vector<8x128xf32>,
    %13 = vector.extract_strided_slice %7 {offsets = [0, 0], sizes = [8, 8], strides = [1, 1]} : vector<8x32xf32> to vector<8x8xf32>
    %c0_5 = arith.constant 0 : index
    %c32 = arith.constant 32 : index
    %14 = vector.load %arg7[%c0_5, %c32] : memref<8x192xf32, #tpu.memory_space<vmem>>, vector<8x8xf32>
    %c0_6 = arith.constant 0 : index
    %c64 = arith.constant 64 : index
    %15 = vector.load %arg7[%c0_6, %c64] : memref<8x192xf32, #tpu.memory_space<vmem>>, vector<8x8xf32>
    %cst = arith.constant dense<0.000000e+00> : vector<8x8xf32>
    %16 = tpu.matmul %13, %14, %cst {dimension_numbers = #tpu.dot_dimension_numbers<[1], [1], [0], [0], [0, 0, 1, 0], [], []>} : vector<8x8xf32>, vector<8x8xf32>, vector<8x8xf32> -> vector<8x8xf32>
    %cst_7 = arith.constant dense<0xFF800000> : vector<8xf32>
    %17 = vector.multi_reduction <maximumf>, %16, %cst_7 [1] : vector<8x8xf32> to vector<8xf32>
    %18 = vector.shape_cast %17 : vector<8xf32> to vector<8x1xf32>
    %19 = vector.broadcast %18 : vector<8x1xf32> to vector<8x8xf32>
    %20 = arith.subf %16, %19 : vector<8x8xf32>
    %21 = math.exp %20 : vector<8x8xf32>
    %cst_8 = arith.constant dense<0.000000e+00> : vector<8xf32>
    %22 = vector.multi_reduction <add>, %21, %cst_8 [1] : vector<8x8xf32> to vector<8xf32>
    %23 = vector.shape_cast %22 : vector<8xf32> to vector<8x1xf32>
    %24 = tpu.reciprocal %23 : vector<8x1xf32> -> vector<8x1xf32>
    %25 = vector.broadcast %24 : vector<8x1xf32> to vector<8x8xf32>
    %26 = arith.mulf %21, %25 : vector<8x8xf32>
    %cst_9 = arith.constant dense<0.000000e+00> : vector<8x8xf32>
    %27 = tpu.matmul %26, %15, %cst_9 {dimension_numbers = #tpu.dot_dimension_numbers<[1], [0], [0], [1], [0, 0, 1, 1], [], []>} : vector<8x8xf32>, vector<8x8xf32>, vector<8x8xf32> -> vector<8x8xf32>
    %c0_10 = arith.constant 0 : index
    %c0_11 = arith.constant 0 : index
    %28 = vector.load %arg4[%c0_10, %c0_11] : memref<32x128xf32, #tpu.memory_space<vmem>>, vector<8x128xf32>
    %c0_12 = arith.constant 0 : index
    %c0_13 = arith.constant 0 : index
    %29 = vector.load %arg8[%c0_12, %c0_13] : memref<8x128xf32, #tpu.memory_space<vmem>>, vector<8x128xf32>
    %cst_14 = arith.constant dense<0.000000e+00> : vector<8x128xf32>
    %30 = tpu.matmul %27, %28, %cst_14 {dimension_numbers = #tpu.dot_dimension_numbers<[1], [0], [0], [1], [0, 0, 1, 1], [], []>} : vector<8x8xf32>, vector<8x128xf32>, vector<8x128xf32> -> vector<8x128xf32>
    %31 = arith.addf %29, %30 : vector<8x128xf32>
    %c0_15 = arith.constant 0 : index
    %c0_16 = arith.constant 0 : index
    %32 = vector.load %arg8[%c0_15, %c0_16] : memref<8x128xf32, #tpu.memory_space<vmem>>, vector<8x128xf32>
    tpu.vector_store %arg8[%c0_15, %c0_16], %31 {strides = array<i32>} : memref<8x128xf32, #tpu.memory_space<vmem>>, vector<8x128xf32>,
    %33 = vector.extract_strided_slice %7 {offsets = [0, 8], sizes = [8, 8], strides = [1, 1]} : vector<8x32xf32> to vector<8x8xf32>
    %c0_17 = arith.constant 0 : index
    %c40 = arith.constant 40 : index
    %34 = vector.load %arg7[%c0_17, %c40] : memref<8x192xf32, #tpu.memory_space<vmem>>, vector<8x8xf32>
    %c0_18 = arith.constant 0 : index
    %c72 = arith.constant 72 : index
    %35 = vector.load %arg7[%c0_18, %c72] : memref<8x192xf32, #tpu.memory_space<vmem>>, vector<8x8xf32>
    %cst_19 = arith.constant dense<0.000000e+00> : vector<8x8xf32>
    %36 = tpu.matmul %33, %34, %cst_19 {dimension_numbers = #tpu.dot_dimension_numbers<[1], [1], [0], [0], [0, 0, 1, 0], [], []>} : vector<8x8xf32>, vector<8x8xf32>, vector<8x8xf32> -> vector<8x8xf32>
    %cst_20 = arith.constant dense<0xFF800000> : vector<8xf32>
    %37 = vector.multi_reduction <maximumf>, %36, %cst_20 [1] : vector<8x8xf32> to vector<8xf32>
    %38 = vector.shape_cast %37 : vector<8xf32> to vector<8x1xf32>
    %39 = vector.broadcast %38 : vector<8x1xf32> to vector<8x8xf32>
    %40 = arith.subf %36, %39 : vector<8x8xf32>
    %41 = math.exp %40 : vector<8x8xf32>
    %cst_21 = arith.constant dense<0.000000e+00> : vector<8xf32>
    %42 = vector.multi_reduction <add>, %41, %cst_21 [1] : vector<8x8xf32> to vector<8xf32>
    %43 = vector.shape_cast %42 : vector<8xf32> to vector<8x1xf32>
    %44 = tpu.reciprocal %43 : vector<8x1xf32> -> vector<8x1xf32>
    %45 = vector.broadcast %44 : vector<8x1xf32> to vector<8x8xf32>
    %46 = arith.mulf %41, %45 : vector<8x8xf32>
    %cst_22 = arith.constant dense<0.000000e+00> : vector<8x8xf32>
    %47 = tpu.matmul %46, %35, %cst_22 {dimension_numbers = #tpu.dot_dimension_numbers<[1], [0], [0], [1], [0, 0, 1, 1], [], []>} : vector<8x8xf32>, vector<8x8xf32>, vector<8x8xf32> -> vector<8x8xf32>
    %c8 = arith.constant 8 : index
    %c0_23 = arith.constant 0 : index
    %48 = vector.load %arg4[%c8, %c0_23] : memref<32x128xf32, #tpu.memory_space<vmem>>, vector<8x128xf32>
    %c0_24 = arith.constant 0 : index
    %c0_25 = arith.constant 0 : index
    %49 = vector.load %arg8[%c0_24, %c0_25] : memref<8x128xf32, #tpu.memory_space<vmem>>, vector<8x128xf32>
    %cst_26 = arith.constant dense<0.000000e+00> : vector<8x128xf32>
    %50 = tpu.matmul %47, %48, %cst_26 {dimension_numbers = #tpu.dot_dimension_numbers<[1], [0], [0], [1], [0, 0, 1, 1], [], []>} : vector<8x8xf32>, vector<8x128xf32>, vector<8x128xf32> -> vector<8x128xf32>
    %51 = arith.addf %49, %50 : vector<8x128xf32>
    %c0_27 = arith.constant 0 : index
    %c0_28 = arith.constant 0 : index
    %52 = vector.load %arg8[%c0_27, %c0_28] : memref<8x128xf32, #tpu.memory_space<vmem>>, vector<8x128xf32>
    tpu.vector_store %arg8[%c0_27, %c0_28], %51 {strides = array<i32>} : memref<8x128xf32, #tpu.memory_space<vmem>>, vector<8x128xf32>,
    %53 = vector.extract_strided_slice %7 {offsets = [0, 16], sizes = [8, 8], strides = [1, 1]} : vector<8x32xf32> to vector<8x8xf32>
    %c0_29 = arith.constant 0 : index
    %c48 = arith.constant 48 : index
    %54 = vector.load %arg7[%c0_29, %c48] : memref<8x192xf32, #tpu.memory_space<vmem>>, vector<8x8xf32>
    %c0_30 = arith.constant 0 : index
    %c80 = arith.constant 80 : index
    %55 = vector.load %arg7[%c0_30, %c80] : memref<8x192xf32, #tpu.memory_space<vmem>>, vector<8x8xf32>
    %cst_31 = arith.constant dense<0.000000e+00> : vector<8x8xf32>
    %56 = tpu.matmul %53, %54, %cst_31 {dimension_numbers = #tpu.dot_dimension_numbers<[1], [1], [0], [0], [0, 0, 1, 0], [], []>} : vector<8x8xf32>, vector<8x8xf32>, vector<8x8xf32> -> vector<8x8xf32>
    %cst_32 = arith.constant dense<0xFF800000> : vector<8xf32>
    %57 = vector.multi_reduction <maximumf>, %56, %cst_32 [1] : vector<8x8xf32> to vector<8xf32>
    %58 = vector.shape_cast %57 : vector<8xf32> to vector<8x1xf32>
    %59 = vector.broadcast %58 : vector<8x1xf32> to vector<8x8xf32>
    %60 = arith.subf %56, %59 : vector<8x8xf32>
    %61 = math.exp %60 : vector<8x8xf32>
    %cst_33 = arith.constant dense<0.000000e+00> : vector<8xf32>
    %62 = vector.multi_reduction <add>, %61, %cst_33 [1] : vector<8x8xf32> to vector<8xf32>
    %63 = vector.shape_cast %62 : vector<8xf32> to vector<8x1xf32>
    %64 = tpu.reciprocal %63 : vector<8x1xf32> -> vector<8x1xf32>
    %65 = vector.broadcast %64 : vector<8x1xf32> to vector<8x8xf32>
    %66 = arith.mulf %61, %65 : vector<8x8xf32>
    %cst_34 = arith.constant dense<0.000000e+00> : vector<8x8xf32>
    %67 = tpu.matmul %66, %55, %cst_34 {dimension_numbers = #tpu.dot_dimension_numbers<[1], [0], [0], [1], [0, 0, 1, 1], [], []>} : vector<8x8xf32>, vector<8x8xf32>, vector<8x8xf32> -> vector<8x8xf32>
    %c16 = arith.constant 16 : index
    %c0_35 = arith.constant 0 : index
    %68 = vector.load %arg4[%c16, %c0_35] : memref<32x128xf32, #tpu.memory_space<vmem>>, vector<8x128xf32>
    %c0_36 = arith.constant 0 : index
    %c0_37 = arith.constant 0 : index
    %69 = vector.load %arg8[%c0_36, %c0_37] : memref<8x128xf32, #tpu.memory_space<vmem>>, vector<8x128xf32>
    %cst_38 = arith.constant dense<0.000000e+00> : vector<8x128xf32>
    %70 = tpu.matmul %67, %68, %cst_38 {dimension_numbers = #tpu.dot_dimension_numbers<[1], [0], [0], [1], [0, 0, 1, 1], [], []>} : vector<8x8xf32>, vector<8x128xf32>, vector<8x128xf32> -> vector<8x128xf32>
    %71 = arith.addf %69, %70 : vector<8x128xf32>
    %c0_39 = arith.constant 0 : index
    %c0_40 = arith.constant 0 : index
    %72 = vector.load %arg8[%c0_39, %c0_40] : memref<8x128xf32, #tpu.memory_space<vmem>>, vector<8x128xf32>
    tpu.vector_store %arg8[%c0_39, %c0_40], %71 {strides = array<i32>} : memref<8x128xf32, #tpu.memory_space<vmem>>, vector<8x128xf32>,
    %73 = vector.extract_strided_slice %7 {offsets = [0, 24], sizes = [8, 8], strides = [1, 1]} : vector<8x32xf32> to vector<8x8xf32>
    %c0_41 = arith.constant 0 : index
    %c56 = arith.constant 56 : index
    %74 = vector.load %arg7[%c0_41, %c56] : memref<8x192xf32, #tpu.memory_space<vmem>>, vector<8x8xf32>
    %c0_42 = arith.constant 0 : index
    %c88 = arith.constant 88 : index
    %75 = vector.load %arg7[%c0_42, %c88] : memref<8x192xf32, #tpu.memory_space<vmem>>, vector<8x8xf32>
    %cst_43 = arith.constant dense<0.000000e+00> : vector<8x8xf32>
    %76 = tpu.matmul %73, %74, %cst_43 {dimension_numbers = #tpu.dot_dimension_numbers<[1], [1], [0], [0], [0, 0, 1, 0], [], []>} : vector<8x8xf32>, vector<8x8xf32>, vector<8x8xf32> -> vector<8x8xf32>
    %cst_44 = arith.constant dense<0xFF800000> : vector<8xf32>
    %77 = vector.multi_reduction <maximumf>, %76, %cst_44 [1] : vector<8x8xf32> to vector<8xf32>
    %78 = vector.shape_cast %77 : vector<8xf32> to vector<8x1xf32>
    %79 = vector.broadcast %78 : vector<8x1xf32> to vector<8x8xf32>
    %80 = arith.subf %76, %79 : vector<8x8xf32>
    %81 = math.exp %80 : vector<8x8xf32>
    %cst_45 = arith.constant dense<0.000000e+00> : vector<8xf32>
    %82 = vector.multi_reduction <add>, %81, %cst_45 [1] : vector<8x8xf32> to vector<8xf32>
    %83 = vector.shape_cast %82 : vector<8xf32> to vector<8x1xf32>
    %84 = tpu.reciprocal %83 : vector<8x1xf32> -> vector<8x1xf32>
    %85 = vector.broadcast %84 : vector<8x1xf32> to vector<8x8xf32>
    %86 = arith.mulf %81, %85 : vector<8x8xf32>
    %cst_46 = arith.constant dense<0.000000e+00> : vector<8x8xf32>
    %87 = tpu.matmul %86, %75, %cst_46 {dimension_numbers = #tpu.dot_dimension_numbers<[1], [0], [0], [1], [0, 0, 1, 1], [], []>} : vector<8x8xf32>, vector<8x8xf32>, vector<8x8xf32> -> vector<8x8xf32>
    %c24 = arith.constant 24 : index
    %c0_47 = arith.constant 0 : index
    %88 = vector.load %arg4[%c24, %c0_47] : memref<32x128xf32, #tpu.memory_space<vmem>>, vector<8x128xf32>
    %c0_48 = arith.constant 0 : index
    %c0_49 = arith.constant 0 : index
    %89 = vector.load %arg8[%c0_48, %c0_49] : memref<8x128xf32, #tpu.memory_space<vmem>>, vector<8x128xf32>
    %cst_50 = arith.constant dense<0.000000e+00> : vector<8x128xf32>
    %90 = tpu.matmul %87, %88, %cst_50 {dimension_numbers = #tpu.dot_dimension_numbers<[1], [0], [0], [1], [0, 0, 1, 1], [], []>} : vector<8x8xf32>, vector<8x128xf32>, vector<8x128xf32> -> vector<8x128xf32>
    %91 = arith.addf %89, %90 : vector<8x128xf32>
    %c0_51 = arith.constant 0 : index
    %c0_52 = arith.constant 0 : index
    %92 = vector.load %arg8[%c0_51, %c0_52] : memref<8x128xf32, #tpu.memory_space<vmem>>, vector<8x128xf32>
    tpu.vector_store %arg8[%c0_51, %c0_52], %91 {strides = array<i32>} : memref<8x128xf32, #tpu.memory_space<vmem>>, vector<8x128xf32>,
    %c0_53 = arith.constant 0 : index
    %c0_54 = arith.constant 0 : index
    %93 = vector.load %arg8[%c0_53, %c0_54] : memref<8x128xf32, #tpu.memory_space<vmem>>, vector<8x128xf32>
    %c0_55 = arith.constant 0 : index
    %c0_56 = arith.constant 0 : index
    %c0_57 = arith.constant 0 : index
    %94 = vector.load %arg6[%c0_55, %c0_56, %c0_57] : memref<1x8x128xf32, #tpu.memory_space<vmem>>, vector<1x8x128xf32>
    %95 = vector.shape_cast %94 : vector<1x8x128xf32> to vector<8x128xf32>
    %96 = vector.shape_cast %93 : vector<8x128xf32> to vector<1x8x128xf32>
    tpu.vector_store %arg6[%c0_55, %c0_56, %c0_57], %96 {strides = array<i32>} : memref<1x8x128xf32, #tpu.memory_space<vmem>>, vector<1x8x128xf32>,
    return
  }
  func.func @transform_0(%arg0: i32, %arg1: i32) -> (i32, i32, i32) {
    %c0_i32 = arith.constant 0 : i32
    %c0_i32_0 = arith.constant 0 : i32
    %c0_i32_1 = arith.constant 0 : i32
    return %arg0, %c0_i32, %c0_i32_0 : i32, i32, i32
  }
  func.func @transform_1(%arg0: i32, %arg1: i32) -> (i32, i32) {
    %c0_i32 = arith.constant 0 : i32
    %c0_i32_0 = arith.constant 0 : i32
    %c0_i32_1 = arith.constant 0 : i32
    return %c0_i32, %c0_i32_0 : i32, i32
  }
  func.func @transform_2(%arg0: i32, %arg1: i32) -> (i32, i32) {
    %c0_i32 = arith.constant 0 : i32
    %c0_i32_0 = arith.constant 0 : i32
    %c0_i32_1 = arith.constant 0 : i32
    return %c0_i32, %c0_i32_0 : i32, i32
  }
  func.func @transform_3(%arg0: i32, %arg1: i32) -> (i32, i32) {
    %c0_i32 = arith.constant 0 : i32
    %c0_i32_0 = arith.constant 0 : i32
    %c0_i32_1 = arith.constant 0 : i32
    return %c0_i32, %c0_i32_0 : i32, i32
  }
  func.func @transform_4(%arg0: i32, %arg1: i32) -> (i32, i32, i32) {
    %c0_i32 = arith.constant 0 : i32
    %c0_i32_0 = arith.constant 0 : i32
    return %arg0, %arg1, %c0_i32 : i32, i32, i32
  }
}

</mosaic_0001>

<bundles_post_ra>
// kernel: tpu_custom_call.1
= control target key start
LH: loop header
LB: loop body
LE: loop exit
PB: predicated region body
PF: predicated region fallthrough
CT: control target
= control target key end

     0   :  { %9 = vsyncpa [#allocation5], 0  ;;  %s1469_s0 = inlined_call_operand.hbm [shape: f32[2,8,32], index: 0, kind: input, shape index: {}]   ;;  %s1470_s1 = inlined_call_operand.hbm [shape: f32[32,192], index: 1, kind: input, shape index: {}]   ;;  %s1471_s2 = inlined_call_operand.hbm [shape: f32[32,128], index: 2, kind: input, shape index: {}]   ;;  %s1472_s3 = inlined_call_operand.vmem [shape: f32[1,128], index: 3, kind: input, shape index: {}]   ;;  %s1473_s4 = inlined_call_operand.hbm [shape: f32[2,8,128], index: 4, kind: output, shape index: {}]  }
   0x1   :  { %11 = vsyncpa [#allocation5 + $0x1], 0 }
   0x2   :  { %12 = vsyncpa [#allocation8], 0 }
   0x3   :  { %13 = vsyncpa [#allocation6], 0 }
   0x4   :  { %15 = vsyncpa [#allocation6 + $0x1], 0  ;;  %s1265_s15 = smov 0   ;;  %s1267_s16 = smov 0  }
   0x5   :  { %s1269_s17 = smov 0   ;;  %s1271_s18 = smov 0  }
   0x6   :  { %s1273_s19 = smov 0   ;;  %s1275_s20 = smov 0  }
   0x7 LB: > { %s895_s21 = sadd.s32 4294967295, %s1221_s20   ;;  %p897_p0 = scmp.ge.s32.totalorder %s1221_s20, 1  ;;  %s1221_s20 = sphi %s1275_s20, %s21_s20   ;;  %s1217_s19 = sphi %s1273_s19, %s1483_s19   ;;  %s1213_s18 = sphi %s1271_s18, %s1482_s18   ;;  %s1209_s17 = sphi %s1269_s17, %s1481_s17   ;;  %s1205_s16 = sphi %s1267_s16, %s1480_s16   ;;  %s1201_s15 = sphi %s1265_s15, %s1479_s15  }
   0x8   : > { %p1299_p1 = scmp.eq.s32.totalorder %s895_s21, 0  ;;  %p155_p2 = scmp.lt.s32.totalorder %s1221_s20, 3 }
   0x9   : > { %s166_s25 = sshll.u32 %s1470_s1, 4  ;;  %s1223_s27 = smov [#allocation7]   ;;  %s167_s25 = int_to_ptr.hbm [resolvable:$true] %s166_s25 }
   0xa   : > { %p1307_p3 = pnand %p897_p0, %p155_p2  ;;  %s168_s28 = sshll.u32 %s1223_s27, 4  ;;  %s169_s28 = int_to_ptr.vmem [resolvable:$true] %s168_s28 }
   0xb   : > { %p900_p6 = scmp.ge.s32.totalorder %s1221_s20, 2  ;;  %s180_s5 = sshll.u32 %s1471_s2, 4  ;;  %s181_s5 = int_to_ptr.hbm [resolvable:$true] %s180_s5 }
   0xc   : > { %p942_p4 = pneg %p1307_p3  ;;  %s1224_s6 = smov 256  }
   0xd   : > { %s1225_s7 = smov 16   ;;  %s1226_s8 = smov [#allocation9]  }
   0xe   : > { %p943_p5 = pnand %p942_p4, %p1299_p1  ;;  %s182_s9 = sshll.u32 %s1226_s8, 4  ;;  %s183_s9 = int_to_ptr.vmem [resolvable:$true] %s182_s9 }
   0xf   : > { %s1227_s10 = smov 128   ;;  %s1228_s11 = smov 8  }
  0x10   : > { %945 = dma.hbm_to_vmem [thread:$0]  (!%p943_p5), %s167_s25, 1024, %s169_s28, [#allocation8], %s1224_s6, %s1224_s6, %s1225_s7  }
  0x11   : > { %948 = dma.hbm_to_vmem [thread:$0]  (!%p943_p5), %s181_s5, 512, %s183_s9, [#allocation8], %s1227_s10, %s1227_s10, %s1228_s11  }
  0x12   : > { %s33_s12 = sadd.s32 1, %s1217_s19  ;;  %s896_s13 = sadd.s32 4294967294, %s1221_s20  }
  0x13   : > { %p35_p7 = scmp.ge.s32.totalorder %s33_s12, 2  ;;  %s40_s14 = sadd.s32 1, %s1209_s17 }
  0x14   : > { %p47_p8 = scmp.ne.s32.totalorder %s1209_s17, %s1205_s16  ;;  %p48_p9 = scmp.eq.s32.totalorder %s1221_s20, 0 }
  0x15   : > { %s1485_s12 = smov (%p35_p7, %s33_s12), 0  ;;  %p53_p10 = scmp.ne.s32.totalorder %s1205_s16, %s1201_s15 }
  0x16   : > { %s37_s23 = ssub.s32 %s1217_s19, %s1485_s12  ;;  %p142_p11 = scmp.eq.s32.totalorder %s895_s21, 1 }
  0x17   : > { %p38_p12 = scmp.eq.s32.totalorder %s37_s23, 0  ;;  %p1335_p13 = por %p1299_p1, %p53_p10 }
  0x18   : > { %p1339_p0 = por %p142_p11, %p47_p8  ;;  %p148_p2 = scmp.eq.s32.totalorder %s896_s13, 1 }
  0x19   : > { %s1344_s27 = scalar_select %p38_p12, %s1209_s17, %s40_s14  }
  0x1a   : > { %p49_p4 = por %p48_p9, %p47_p8  ;;  %p1346_p5 = por %p148_p2, %p53_p10 }
  0x1b   : > { %s199_s29 = sand.u32 1, %s1209_s17   ;;  %s902_s21 = sshll.u32 %s1217_s19, 3 }
  0x1c   : > { %p959_p7 = scmp.lt.s32.totalorder %s1221_s20, 2  ;;  %s901_s30 = sshll.u32 %s199_s29, 3 }
  0x1d   : > { %s207_s7 = scalar_lea.hbm %s1469_s0, %s902_s21  ;;  %s203_s9 = scalar_lea.vmem [#allocation4], %s901_s30 }
  0x1e   : > { %s209_s8 = sshll.u32 %s207_s7, 4  ;;  %s211_s10 = sshll.u32 %s203_s9, 4  ;;  %s210_s8 = int_to_ptr.hbm [resolvable:$true] %s209_s8  ;;  %s212_s10 = int_to_ptr.vmem [resolvable:$true] %s211_s10 }
  0x1f   : > { %p950_p11 = pnand %p959_p7, %p49_p4  ;;  %s200_s11 = scalar_lea.sflag [#allocation5], %s199_s29 }
  0x20   : > { %220 = sbr.rel (%p1307_p3) target bundleno = 1489 (0x5d1), region = 36  ;;  %s1359_s13 = sand.u32 (!%p1307_p3), 1, %s1205_s16  }
  0x21   : > { %952 = dma.hbm_to_vmem [thread:$0]  (!%p950_p11), %s210_s8, 128, %s212_s10, %s200_s11  }
  0x22   : > { %s904_s14 = sshll.u32 (!%p1307_p3), %s1359_s13, 3  ;;  %s223_s23 = scalar_lea.sflag (!%p1307_p3), [#allocation5], %s1359_s13 }
  0x23   : > { %s226_s21 = scalar_lea.vmem (!%p1307_p3), [#allocation4], %s904_s14 }
  0x25   : > { %1188 = dma.done.wait (%p1335_p13), %s223_s23, 128  }
  0x26   : > { %1190 = vsyncadd (%p1335_p13), %s223_s23, 4294967168 }
  0x27   : > { %1192 = dma.done.wait (%p1299_p1), [#allocation8], 1536  }
  0x28   : > { %1194 = vsyncadd (%p1299_p1), [#allocation8], 4294965760  ;;  %v273_v0 = vld [vmem:[#allocation7 + $0x30] sm:$0xff]  ;;  %v271_v1 = vld [vmem:[#allocation7 + $0x20] sm:$0xff]  ;;  %vm275_vm0 = vcmask 261120   ;;  %s1229_s26 = smov 96  }
  0x29   : > { %291 = vmatpush.msra.mxu0 %v273_v0  ;;  %v269_v2 = vld [vmem:[#allocation7 + $0x10] sm:$0xff]  ;;  %v267_v3 = vld [vmem:[#allocation7] sm:$0xff]  ;;  %s1230_s24 = smov 120   ;;  %s1231_s22 = smov 88   ;;  %vm352_vm1 = vcmask 64512   ;;  %v274_v13 = vld [vmem:[#allocation7 + $0x38] sm:$0xff] }
  0x2a   : > { %v266_v4 = vld [vmem:[%s226_s21] sm:$0xff]  ;;  %s1232_s29 = smov 72   ;;  %v272_v14 = vld [vmem:[#allocation7 + $0x28] sm:$0xff]  ;;  %311 = vmatpush.msra.mxu1 %v274_v13  ;;  %s1233_s30 = smov 64   ;;  %v428_v31 = vld [vmem:[#allocation9] sm:$0xff]  ;;  %vm320_vm10 = vcmask 523264  }
  0x2b   : > { %292 = vmatpush.msra.mxu0 %v271_v1  ;;  %v270_v15 = vld [vmem:[#allocation7 + $0x18] sm:$0xff]  ;;  %v268_v16 = vld [vmem:[#allocation7 + $0x8] sm:$0xff]  ;;  %s1234_s5 = smov 104   ;;  %s1235_s6 = smov 56  }
  0x2c   : > { %312 = vmatpush.msra.mxu1 %v272_v14  ;;  %v535_v17 = vld [vmem:[#allocation9 + $0x8] sm:$0xff]  ;;  %s1236_s7 = smov 80   ;;  %s1237_s8 = smov 112  }
  0x2d   : > { %293 = vmatpush.msra.mxu0 %v269_v2  ;;  %s1238_s9 = smov 48   ;;  %s1239_s23 = smov 40  }
  0x2e   : > { %313 = vmatpush.msra.mxu1 %v270_v15  ;;  %s927_s21 = sshll.u32 %s1213_s18, 3  ;;  %s779_s18 = scalar_lea.sflag [#allocation6], %s1359_s13 }
  0x2f   : > { %294 = vmatpush.msra.mxu0 %v267_v3 }
  0x30   : > { %908 = vmatmul.msk.f32.vlgmr.msra.gmra.mxu0 %vm275_vm0, %v266_v4  ;;  %314 = vmatpush.msra.mxu1 %v268_v16  ;;  %v1028_v16 = vld [vmem:[%s1472_s3] ss:$0 sm:$0xff] }
  0x31   : > { %909 = vmatmul.msk.f32.vlgmr.msra.gmra.mxu1 %vm275_vm0, %v266_v4 }
  0x32   : > { %555 = vmatpush.msrb.mxu1 %v535_v17 }
  0xad   : > { %v1374_v5 = vpop.f32.mrf.mxu0 }
  0xae   : > { %350 = vrot.lane.b32.xlu0 %v1374_v5, %s1229_s26  ;;  %456 = vrot.lane.b32.xlu1 %v1374_v5, %s1230_s24  ;;  %v316_v57 = vpop.f32.mrf.mxu1 }
  0xaf   : > { %321 = vst.msk [vmem:[#allocation2 + $0x8] sm:$0xff] %vm320_vm10, %v316_v57 }
  0xb6   : > { %459 = vrot.lane.b32.xlu0 %v1374_v5, %s1231_s22  ;;  %s790_s22 = scalar_lea.hbm %s1473_s4, %s927_s21 }
 0x120   : > { %v351_v6 = vpop.permute.xlu0 %350  ;;  %v457_v8 = vpop.permute.xlu1 %456 }
 0x121   : > { %910 = vmatpush.xpose.msk.msra.mxu2 %vm352_vm1, %v351_v6 }
 0x124   : > { %911 = vmatmul.msk.f32.vlgmr.msra.gmra.mxu2 %vm352_vm1, %v1374_v5 }
 0x128   : > { %v460_v7 = vpop.permute.xlu0 %459 }
 0x129   : > { %914 = vmatpush.xpose.msk.msrb.mxu2 %vm352_vm1, %v460_v7 }
 0x12c   : > { %915 = vmatmul.msk.f32.vlgmr.msrb.gmra.mxu2 %vm352_vm1, %v457_v8 }
 0x1a7   : > { %v375_v9 = vpop.f32.mrf.mxu2 }
 0x1a8   : > { %v378_v10 = vsel %vm352_vm1, %v375_v9, -inf }
 0x1a9   : > { %379 = vmax.xlane.f32.xlu1 %v378_v10 }
 0x1af   : > { %v482_v11 = vpop.f32.mrf.mxu2 }
 0x1b0   : > { %v485_v12 = vsel %vm352_vm1, %v482_v11, -inf }
 0x1b1   : > { %486 = vmax.xlane.f32.xlu2 %v485_v12 }
 0x1c2   : > { %673 = vrot.lane.b32.xlu1 %v1374_v5, %s1232_s29  ;;  %s261_s29 = scalar_lea.vmem [#allocation10], %s904_s14  ;;  %s1155_s14 = scalar_lea.hbm %s1473_s4, 16 }
 0x21c   : > { %v380_v18 = vpop.xlane.xlu1 %379 }
 0x21d   : > { %v381_v19 = vsub.f32 %v375_v9, %v380_v18 }
 0x21f   : > { %v382_v20 = vmul.f32 1.442695, %v381_v19 }
 0x221   : > { %1029 = vpow2.f32 %v382_v20 }
 0x224   : > { %v487_v21 = vpop.xlane.xlu2 %486 }
 0x225   : > { %v488_v22 = vsub.f32 %v482_v11, %v487_v21 }
 0x227   : > { %v1030_v23 = vpop.eup %1029  ;;  %v489_v24 = vmul.f32 1.442695, %v488_v22 }
 0x228   : > { %v384_v25 = vsel %vm352_vm1, %v1030_v23, 0.0 }
 0x229   : > { %1031 = vpow2.f32 %v489_v24  ;;  %385 = vadd.xlane.f32.xlu2 %v384_v25 }
 0x22f   : > { %v1032_v26 = vpop.eup %1031 }
 0x230   : > { %v491_v27 = vsel %vm352_vm1, %v1032_v26, 0.0 }
 0x231   : > { %492 = vadd.xlane.f32.xlu0 %v491_v27 }
 0x234   : > { %v674_v28 = vpop.permute.xlu1 %673 }
 0x235   : > { %922 = vmatpush.xpose.msk.msra.mxu1 %vm352_vm1, %v674_v28 }
 0x241   : > { %402 = vrot.lane.b32.xlu2 %v1374_v5, %s1233_s30 }
 0x245   : > { %670 = vrot.lane.b32.xlu0 %v1374_v5, %s1234_s5  ;;  %s794_s5 = sshll.u32 %s790_s22, 4  ;;  %s795_s5 = int_to_ptr.hbm [resolvable:$true] %s794_s5 }
 0x249   : > { %509 = vrot.lane.b32.xlu2 %v1374_v5, %s1235_s6  ;;  %s1149_s6 = sshra.s32 %s795_s5, 4  ;;  %s1150_s6 = int_to_ptr.hbm [resolvable:$true] %s1149_s6 }
 0x24a   : > { %p1156_p9 = scmp.lt.s32.totalorder %s1150_s6, %s1473_s4 }
 0x251   : > { %566 = vrot.lane.b32.xlu2 %v1374_v5, %s1236_s7  ;;  %s1151_s7 = scalar_lea.hbm %s1150_s6, 8 }
 0x252   : > { %p1152_p1 = scmp.ne.s32.totalorder %s1150_s6, %s1151_s7  ;;  %p1157_p10 = scmp.lt.s32.totalorder %s1155_s14, %s1151_s7 }
 0x254   : > { %p1153_p3 = pnand %p1152_p1, %p1339_p0  ;;  %p1158_p12 = por %p1157_p10, %p1156_p9 }
 0x256   : > { %p1154_p8 = pneg %p1153_p3 }
 0x258   : > { %p1159_p13 = pnand %p1158_p12, %p1154_p8 }
 0x259   : > { %563 = vrot.lane.b32.xlu2 %v1374_v5, %s1237_s8 }
 0x29c   : > { %v386_v29 = vpop.xlane.xlu2 %385 }
 0x29d   : > { %1033 = vrcp.f32 %v386_v29  ;;  %v398_v36 = vand.u32 2147483648, %v386_v29  ;;  %v396_v38 = vand.u32 2147483647, %v386_v29  ;;  %vm392_vm3 = vweird.f32 %v386_v29 }
 0x29f   : > { %v399_v41 = vor.u32 1.1754944e-38, %v398_v36  ;;  %vm397_vm5 = vcmp.eq.f32.partialorder %v396_v38, 8.507059e+37 }
 0x2a3   : > { %v1034_v30 = vpop.eup %1033 }
 0x2a4   : > { %v388_v32 = vmul.f32 %v1034_v30, %v386_v29  ;;  %v493_v33 = vpop.xlane.xlu0 %492  ;;  %v403_v34 = vpop.permute.xlu2 %402  ;;  %vm393_vm2 = vweird.f32 %v1034_v30 }
 0x2a5   : > { %1035 = vrcp.f32 %v493_v33  ;;  %423 = vmatpush.msra.mxu3 %v403_v34  ;;  %vm394_vm4 = vmor %vm392_vm3, %vm393_vm2  ;;  %v505_v48 = vand.u32 2147483648, %v493_v33  ;;  %v503_v50 = vand.u32 2147483647, %v493_v33  ;;  %vm499_vm7 = vweird.f32 %v493_v33 }
 0x2a6   : > { %v389_v35 = vsub.f32 1.0, %v388_v32 }
 0x2a7   : > { %448 = vmatpush.msrb.mxu3 %v428_v31  ;;  %v506_v52 = vor.u32 1.1754944e-38, %v505_v48  ;;  %vm504_vm9 = vcmp.eq.f32.partialorder %v503_v50, 8.507059e+37 }
 0x2a8   : > { %v390_v37 = vmul.f32 %v1034_v30, %v389_v35 }
 0x2aa   : > { %v391_v39 = vadd.f32 %v1034_v30, %v390_v37 }
 0x2ab   : > { %v1036_v40 = vpop.eup %1035 }
 0x2ac   : > { %v495_v42 = vmul.f32 %v1036_v40, %v493_v33  ;;  %v510_v43 = vpop.permute.xlu2 %509  ;;  %v395_v44 = vsel %vm394_vm4, %v1034_v30, %v391_v39  ;;  %vm500_vm6 = vweird.f32 %v1036_v40  ;;  %v329_v39 = vld [vmem:[#allocation2 + $0x8] sm:$0xff] }
 0x2ad   : > { %530 = vmatpush.msrb.mxu0 %v510_v43  ;;  %v400_v45 = vsel %vm397_vm5, %v399_v41, %v395_v44  ;;  %vm501_vm8 = vmor %vm499_vm7, %vm500_vm6 }
 0x2ae   : > { %v496_v46 = vsub.f32 1.0, %v495_v42  ;;  %v401_v47 = vmul.f32 %v1030_v23, %v400_v45 }
 0x2b0   : > { %v497_v49 = vmul.f32 %v1036_v40, %v496_v46  ;;  %912 = vmatmul.msk.f32.vlgmr.msra.gmra.mxu3 %vm352_vm1, %v401_v47  ;;  %v749_v46 = vld [vmem:[#allocation9 + $0x18] sm:$0xff]  ;;  %v642_v47 = vld [vmem:[#allocation9 + $0x10] sm:$0xff] }
 0x2b1   : > { %662 = vmatpush.msra.mxu0 %v642_v47 }
 0x2b2   : > { %v498_v51 = vadd.f32 %v1036_v40, %v497_v49 }
 0x2b4   : > { %v567_v53 = vpop.permute.xlu2 %566  ;;  %v502_v54 = vsel %vm501_vm8, %v1036_v40, %v498_v51 }
 0x2b5   : > { %918 = vmatpush.xpose.msk.msra.mxu3 %vm352_vm1, %v567_v53  ;;  %v507_v55 = vsel %vm504_vm9, %v506_v52, %v502_v54 }
 0x2b6   : > { %v508_v56 = vmul.f32 %v1032_v26, %v507_v55 }
 0x2b7   : > { %v671_v61 = vpop.permute.xlu0 %670 }
 0x2b8   : > { %916 = vmatmul.msk.f32.vlgmr.msrb.gmra.mxu0 %vm352_vm1, %v508_v56 }
 0x2bc   : > { %v564_v60 = vpop.permute.xlu2 %563 }
 0x333   : > { %v425_v58 = vpop.f32.mrf.mxu3 }
 0x334   : > { %913 = vmatmul.msk.f32.vlgmr.msrb.gmra.mxu3 %vm352_vm1, %v425_v58 }
 0x335   : > { %v532_v59 = vpop.f32.mrf.mxu0 }
 0x336   : > { %917 = vmatmul.msk.f32.vlgmr.msrb.gmra.mxu1 %vm352_vm1, %v532_v59 }
 0x33c   : > { %919 = vmatmul.msk.f32.vlgmr.msra.gmra.mxu3 %vm352_vm1, %v564_v60 }
 0x33e   : > { %923 = vmatmul.msk.f32.vlgmr.msra.gmra.mxu1 %vm352_vm1, %v671_v61 }
 0x3b3   : > { %v1405_v62 = vpop.f32.mrf.mxu1 }
 0x3b7   : > { %v1407_v63 = vpop.f32.mrf.mxu3 }
 0x3bb   : > { %v696_v0 = vpop.f32.mrf.mxu1 }
 0x3bc   : > { %v699_v1 = vsel %vm352_vm1, %v696_v0, -inf }
 0x3bd   : > { %700 = vmax.xlane.f32.xlu2 %v699_v1 }
 0x3bf   : > { %v589_v2 = vpop.f32.mrf.mxu3 }
 0x3c0   : > { %v592_v3 = vsel %vm352_vm1, %v589_v2, -inf }
 0x3c1   : > { %593 = vmax.xlane.f32.xlu1 %v592_v3 }
 0x3da   : > { %616 = vrot.lane.b32.xlu1 %v1374_v5, %s1238_s9 }
 0x430   : > { %v701_v4 = vpop.xlane.xlu2 %700 }
 0x431   : > { %v702_v6 = vsub.f32 %v696_v0, %v701_v4 }
 0x433   : > { %v703_v7 = vmul.f32 1.442695, %v702_v6 }
 0x434   : > { %v594_v8 = vpop.xlane.xlu1 %593 }
 0x435   : > { %1037 = vpow2.f32 %v703_v7  ;;  %v595_v9 = vsub.f32 %v589_v2, %v594_v8 }
 0x437   : > { %v596_v10 = vmul.f32 1.442695, %v595_v9 }
 0x439   : > { %1039 = vpow2.f32 %v596_v10 }
 0x43b   : > { %v1038_v11 = vpop.eup %1037 }
 0x43c   : > { %v705_v12 = vsel %vm352_vm1, %v1038_v11, 0.0 }
 0x43d   : > { %706 = vadd.xlane.f32.xlu0 %v705_v12 }
 0x43f   : > { %v1040_v13 = vpop.eup %1039 }
 0x440   : > { %v598_v14 = vsel %vm352_vm1, %v1040_v13, 0.0 }
 0x441   : > { %599 = vadd.xlane.f32.xlu2 %v598_v14 }
 0x44c   : > { %v617_v15 = vpop.permute.xlu1 %616 }
 0x44d   : > { %637 = vmatpush.msra.mxu2 %v617_v15 }
 0x44f   : > { %769 = vmatpush.msrb.mxu2 %v749_v46 }
 0x451   : > { %333 = vrot.lane.b32.xlu0 %v1028_v16, %s1233_s30 }
 0x459   : > { %723 = vrot.lane.b32.xlu2 %v1374_v5, %s1239_s23 }
 0x4b0   : > { %v707_v17 = vpop.xlane.xlu0 %706 }
 0x4b1   : > { %1041 = vrcp.f32 %v707_v17  ;;  %v717_v23 = vand.u32 2147483647, %v707_v17  ;;  %v719_v24 = vand.u32 2147483648, %v707_v17  ;;  %vm713_vm12 = vweird.f32 %v707_v17 }
 0x4b3   : > { %vm718_vm14 = vcmp.eq.f32.partialorder %v717_v23, 8.507059e+37  ;;  %v720_v30 = vor.u32 1.1754944e-38, %v719_v24 }
 0x4b4   : > { %v600_v18 = vpop.xlane.xlu2 %599 }
 0x4b5   : > { %1043 = vrcp.f32 %v600_v18  ;;  %v612_v31 = vand.u32 2147483648, %v600_v18  ;;  %v610_v34 = vand.u32 2147483647, %v600_v18  ;;  %vm606_vm0 = vweird.f32 %v600_v18 }
 0x4b7   : > { %v1042_v19 = vpop.eup %1041  ;;  %v613_v38 = vor.u32 1.1754944e-38, %v612_v31  ;;  %vm611_vm3 = vcmp.eq.f32.partialorder %v610_v34, 8.507059e+37 }
 0x4b8   : > { %v709_v20 = vmul.f32 %v1042_v19, %v707_v17  ;;  %vm714_vm11 = vweird.f32 %v1042_v19 }
 0x4b9   : > { %vm715_vm13 = vmor %vm713_vm12, %vm714_vm11 }
 0x4ba   : > { %v710_v21 = vsub.f32 1.0, %v709_v20 }
 0x4bb   : > { %v1044_v22 = vpop.eup %1043 }
 0x4bc   : > { %v711_v25 = vmul.f32 %v1042_v19, %v710_v21  ;;  %v602_v26 = vmul.f32 %v1044_v22, %v600_v18  ;;  %v724_v27 = vpop.permute.xlu2 %723  ;;  %vm607_vm15 = vweird.f32 %v1044_v22 }
 0x4bd   : > { %744 = vmatpush.msrb.mxu3 %v724_v27  ;;  %vm608_vm2 = vmor %vm606_vm0, %vm607_vm15 }
 0x4be   : > { %v712_v28 = vadd.f32 %v1042_v19, %v711_v25  ;;  %v603_v29 = vsub.f32 1.0, %v602_v26 }
 0x4c0   : > { %v716_v32 = vsel %vm715_vm13, %v1042_v19, %v712_v28  ;;  %v604_v33 = vmul.f32 %v1044_v22, %v603_v29 }
 0x4c1   : > { %v721_v35 = vsel %vm718_vm14, %v720_v30, %v716_v32 }
 0x4c2   : > { %v605_v36 = vadd.f32 %v1044_v22, %v604_v33  ;;  %v722_v37 = vmul.f32 %v1038_v11, %v721_v35 }
 0x4c3   : > { %v334_v40 = vpop.permute.xlu0 %333 }
 0x4c4   : > { %v609_v41 = vsel %vm608_vm2, %v1044_v22, %v605_v36  ;;  %v336_v42 = vadd.f32 %v334_v40, %v1374_v5  ;;  %v337_v43 = vadd.f32 %v334_v40, %v329_v39  ;;  %924 = vmatmul.msk.f32.vlgmr.msrb.gmra.mxu3 %vm352_vm1, %v722_v37 }
 0x4c5   : > { %v614_v44 = vsel %vm611_vm3, %v613_v38, %v609_v41 }
 0x4c6   : > { %342 = vrot.lane.b32.xlu0 %v337_v43, %s1233_s30  ;;  %340 = vrot.lane.b32.xlu2 %v336_v42, %s1233_s30  ;;  %v615_v45 = vmul.f32 %v1040_v13, %v614_v44  ;;  %s792_s30 = sshll.u32 %s261_s29, 4  ;;  %s793_s30 = int_to_ptr.vmem [resolvable:$true] %s792_s30 }
 0x4c8   : > { %920 = vmatmul.msk.f32.vlgmr.msra.gmra.mxu2 %vm352_vm1, %v615_v45 }
 0x520   : > { %v341_v50 = vpop.permute.xlu2 %340 }
 0x538   : > { %v343_v49 = vpop.permute.xlu0 %342 }
 0x539   : > { %v345_v51 = vsel %vm320_vm10, %v341_v50, %v343_v49 }
 0x53a   : > { %v453_v52 = vadd.f32 %v1407_v63, %v345_v51 }
 0x53c   : > { %v560_v53 = vadd.f32 %v1405_v62, %v453_v52 }
 0x547   : > { %v746_v48 = vpop.f32.mrf.mxu3 }
 0x548   : > { %925 = vmatmul.msk.f32.vlgmr.msrb.gmra.mxu2 %vm352_vm1, %v746_v48 }
 0x54b   : > { %v639_v5 = vpop.f32.mrf.mxu2 }
 0x54c   : > { %921 = vmatmul.msk.f32.vlgmr.msra.gmra.mxu0 %vm352_vm1, %v639_v5 }
 0x5c9   : > { %v664_v54 = vpop.f32.mrf.mxu0 }
 0x5ca   : > { %v667_v55 = vadd.f32 %v664_v54, %v560_v53 }
 0x5cb   : > { %v771_v56 = vpop.f32.mrf.mxu2 }
 0x5cc   : > { %v774_v57 = vadd.f32 %v771_v56, %v667_v55 }
 0x5ce   : > { %777 = vst [vmem:[%s261_s29] sm:$0xff] %v774_v57 }
 0x5cf   : > { %1162 = shalt.err (!%p1159_p13)
}
 0x5d0   : > { %940 = dma.vmem_to_hbm [thread:$0]  (%p1339_p0), %s793_s30, 128, %s795_s5, %s779_s18  }
 0x5d1 PF: > { %s806_s13 = sand.u32 1, %s1201_s15   ;;  %p954_p2 = pnand %p900_p6, %p1346_p5 }
 0x5d2   : > { %s807_s23 = scalar_lea.sflag [#allocation6], %s806_s13 }
 0x5d3   : > { %p955_p4 = pneg %p954_p2 }
 0x5d5   : > { %1196 = dma.done.wait (%p955_p4), %s807_s23, 128  }
 0x5d6   : > { %1198 = vsyncadd (%p955_p4), %s807_s23, 4294967168  ;;  %s21_s20 = sadd.s32 1, %s1221_s20   ;;  %s1479_s15 = smov %s1205_s16 }
 0x5d7   : > { %p18_p7 = scmp.ge.s32.totalorder %s21_s20, 4   ;;  %s1480_s16 = smov %s1209_s17 }
 0x5d8   : > { %s1481_s17 = smov %s1344_s27  ;;  %s1482_s18 = smov %s1217_s19 }
 0x5d9   : > { %s1483_s19 = smov %s1485_s12  ;;  %20 = sbr.rel (!%p18_p7) target bundleno = 7 (0x7), region = 94 }
 0x5de   :  { %813 = vsyncpa [#allocation5], 1 }
 0x5df   :  { %815 = vsyncpa [#allocation5 + $0x1], 1 }
 0x5e0   :  { %816 = vsyncpa [#allocation8], 1 }
 0x5e1   :  { %817 = vsyncpa [#allocation6], 1 }
 0x5e2   :  { %819 = vsyncpa [#allocation6 + $0x1], 1 }

</bundles_post_ra>
